<compile_context>
chip_gen: v7x
topology: tpu7x:2x2x1
jax: 0.10.0
libtpu: 0.0.40
codegen_flags: <defaults>
</compile_context>

<pallas_src>
import math

import jax
import jax.numpy as jnp
from jax.experimental import pallas as pl
from jax.experimental.pallas import tpu as pltpu


def _masked_softmax_kernel(x_ref, m_ref, o_ref):
    # Exact reference semantics (handles fractional masks): (1 - m) * -100000.
    # m_ref may be a (1, 1, L) group block; jnp broadcasting expands it per row.
    bias = (jnp.float32(1.0) - m_ref[...].astype(jnp.float32)) * jnp.float32(-100000.0)
    x = x_ref[...].astype(jnp.float32) + bias
    # numerically stable softmax over the last axis (strictly per-row)
    x_max = jnp.max(x, axis=-1, keepdims=True)
    e = jnp.exp(x - x_max)
    s = jnp.sum(e, axis=-1, keepdims=True)
    # approx reciprocal lowers to the otherwise-idle EUP slot (kernel is HBM-bound)
    o_ref[...] = (e * pl.reciprocal(s, approx=True)).astype(o_ref.dtype)


def _vmem_capacity_bytes():
    try:
        return int(pltpu.get_tpu_info().vmem_capacity_bytes)
    except Exception:  # pragma: no cover - conservative fallback (v7x per-TC size)
        return 64 * 1024 * 1024


def _pick_row_tile(num_rows, bytes_pipe_per_row, bytes_temp_per_row, vmem_budget,
                   min_steps=8):
    """Largest row tile whose double-buffered pipeline blocks plus tile-sized f32
    temporaries fit the VMEM budget, capped at 1024 rows (HBM roofline saturates
    by ~512-1024 rows) and split into >= min_steps grid steps when the row count
    allows (balances v7x's 2 TensorCores, keeps the DMA pipeline busy)."""
    t = vmem_budget // (2 * bytes_pipe_per_row + bytes_temp_per_row)
    t = int(max(8, min(t, 1024)))
    if num_rows <= max(64, 8 * min_steps):
        # tiny problem: a single full-extent block per group; splitting further
        # only adds per-step overhead (full-extent block shapes are always legal)
        return min(t, num_rows)
    t = min(t, -(-num_rows // min_steps))
    t = max(8, (t // 8) * 8)  # keep the non-full tile sublane-aligned
    return t


def _vmem_limit(est_bytes, cap_bytes):
    # generous headroom over estimated blocks+temps, but stay well under the
    # physical VMEM (64 MiB per TC on v7x) so compiler-internal scratch fits
    return int(min(cap_bytes // 2, max(16 * 1024 * 1024, est_bytes + 8 * 1024 * 1024)))


def masked_softmax(batch_sequence, mask, *, row_tile=None):
    """softmax(batch_sequence + (1 - mask) * -100000, axis=-1)."""
    out_shape = jnp.broadcast_shapes(batch_sequence.shape, mask.shape)
    out_dtype = batch_sequence.dtype
    if batch_sequence.shape != tuple(out_shape):
        # TODO(synk): rare case where the mask enlarges the output shape;
        # materializes the broadcast input.
        batch_sequence = jnp.broadcast_to(batch_sequence, out_shape)
    L = out_shape[-1]

    x_nd = batch_sequence.reshape(1, L) if batch_sequence.ndim == 1 else batch_sequence
    lead_x = x_nd.shape[:-1]

    # right-align the mask shape against x (standard broadcasting)
    mshape = (1,) * (x_nd.ndim - mask.ndim) + tuple(mask.shape)
    lead_m = mshape[:-1]

    cap = _vmem_capacity_bytes()
    vmem_budget = min(24 * 1024 * 1024, int(0.35 * cap))
    bytes_temp = L * 8  # tile-sized f32 intermediates (x cast + exp) live across row reductions

    # --- broadcast analysis: keep the mask unexpanded when possible -----------
    k = 0
    while k < len(lead_x) and lead_m[k] == lead_x[k]:
        k += 1
    prefix_grouped = (mshape[-1] == L) and all(d == 1 for d in lead_m[k:])
    G = math.prod(lead_x[:k]) if prefix_grouped else 0
    S = math.prod(lead_x[k:]) if prefix_grouped else 0

    m_rows = None
    if not prefix_grouped:
        # TODO(synk): irregular broadcast patterns (e.g. mask (1, S, L) vs x
        # (B, S, L), or mask last dim == 1) fall back to materializing the
        # broadcast mask in HBM (original dtype to preserve exact semantics).
        m_rows = jnp.broadcast_to(mask, x_nd.shape).reshape(-1, L)
    elif S == 1:
        # mask matches x row-for-row: no cast, no broadcast, just a flat view
        m_rows = mask.reshape(-1, L)

    if m_rows is not None:
        # ---------------- row-matched path: both arrays are (R, L) -----------
        x2 = x_nd.reshape(-1, L)
        R = x2.shape[0]
        bytes_pipe = L * (x2.dtype.itemsize + m_rows.dtype.itemsize
                          + jnp.dtype(out_dtype).itemsize)
        tile = row_tile or _pick_row_tile(R, bytes_pipe, bytes_temp, vmem_budget)
        est = 2 * tile * bytes_pipe + tile * bytes_temp
        out = pl.pallas_call(
            _masked_softmax_kernel,
            out_shape=jax.ShapeDtypeStruct((R, L), out_dtype),
            grid_spec=pltpu.PrefetchScalarGridSpec(
                num_scalar_prefetch=0,
                grid=(pl.cdiv(R, tile),),
                in_specs=[
                    pl.BlockSpec((tile, L), lambda i: (i, 0)),
                    pl.BlockSpec((tile, L), lambda i: (i, 0)),
                ],
                out_specs=pl.BlockSpec((tile, L), lambda i: (i, 0)),
            ),
            compiler_params=pltpu.CompilerParams(
                dimension_semantics=("parallel",),
                vmem_limit_bytes=_vmem_limit(est, cap),
            ),
        )(x2, m_rows)
        return out.reshape(out_shape)

    # ---------------- grouped path: mask stays unexpanded as (G, 1, L) -------
    # Each mask row is DMA'd once per group (block index ignores the row-tile
    # axis, so the block stays resident while the inner axis iterates).
    x3 = x_nd.reshape(G, S, L)
    m3 = mask.reshape(G, 1, L)
    bytes_pipe = L * (x3.dtype.itemsize + jnp.dtype(out_dtype).itemsize)
    min_steps = max(1, -(-8 // G))  # G groups already contribute grid steps
    tile = row_tile or _pick_row_tile(S, bytes_pipe, bytes_temp, vmem_budget,
                                      min_steps=min_steps)
    est = 2 * tile * bytes_pipe + tile * bytes_temp + 2 * L * m3.dtype.itemsize
    out = pl.pallas_call(
        _masked_softmax_kernel,
        out_shape=jax.ShapeDtypeStruct((G, S, L), out_dtype),
        grid_spec=pltpu.PrefetchScalarGridSpec(
            num_scalar_prefetch=0,
            grid=(G, pl.cdiv(S, tile)),
            in_specs=[
                pl.BlockSpec((1, tile, L), lambda g, i: (g, i, 0)),
                pl.BlockSpec((1, 1, L), lambda g, i: (g, 0, 0)),
            ],
            out_specs=pl.BlockSpec((1, tile, L), lambda g, i: (g, i, 0)),
        ),
        compiler_params=pltpu.CompilerParams(
            dimension_semantics=("parallel", "parallel"),
            vmem_limit_bytes=_vmem_limit(est, cap),
        ),
    )(x3, m3)
    return out.reshape(out_shape)


if __name__ == "__main__":
    key = jax.random.PRNGKey(0)
    k1, k2, k3 = jax.random.split(key, 3)

    batch, seq, hidden = 2, 8, 32
    batch_sequence = jax.random.normal(k1, (batch, seq, hidden), dtype=jnp.float32)

    # 1) full-shape mask (same layout as the input) -> row-matched path
    mask = (jax.random.uniform(k2, (batch, seq, hidden)) > 0.3).astype(jnp.float32)
    mask = mask.at[..., 0].set(1.0)  # at least one valid position per row
    out = masked_softmax(batch_sequence, mask)
    jax.block_until_ready(out)
    ref = jax.nn.softmax(batch_sequence + (1.0 - mask) * (-100000.0), axis=-1)
    assert out.shape == batch_sequence.shape
    assert jnp.allclose(out, ref, atol=1e-3, rtol=1e-3), float(jnp.max(jnp.abs(out - ref)))

    # 2) broadcast (B, 1, L) padding mask -> grouped path (mask never materialized)
    mask_b = (jax.random.uniform(k3, (batch, 1, hidden)) > 0.3).astype(jnp.float32)
    mask_b = mask_b.at[..., 0].set(1.0)
    out_b = masked_softmax(batch_sequence, mask_b)
    jax.block_until_ready(out_b)
    ref_b = jax.nn.softmax(batch_sequence + (1.0 - mask_b) * (-100000.0), axis=-1)
    assert out_b.shape == batch_sequence.shape
    assert jnp.allclose(out_b, ref_b, atol=1e-3, rtol=1e-3), float(jnp.max(jnp.abs(out_b - ref_b)))

    print("KERNEL_OK")
</pallas_src>

<mosaic_0001>
module attributes {stable_mosaic.version = 11 : i64} {
  func.func @_masked_softmax_kernel(%arg0: i32, %arg1: memref<16x32xf32, #tpu.memory_space<vmem>>, %arg2: memref<16x32xf32, #tpu.memory_space<vmem>>, %arg3: memref<16x32xf32, #tpu.memory_space<vmem>>) attributes {dimension_semantics = [#tpu.dimension_semantics<parallel>], iteration_bounds = array<i64: 1>, scalar_prefetch = 0 : i64, scratch_operands = 0 : i64, tpu.core_type = #tpu.core_type<tc>, window_params = [{transform_indices = @transform_0, window_bounds = array<i64: 16, 32>}, {transform_indices = @transform_1, window_bounds = array<i64: 16, 32>}, {transform_indices = @transform_2, window_bounds = array<i64: 16, 32>}]} {
    %c0 = arith.constant 0 : index
    %c0_0 = arith.constant 0 : index
    %0 = vector.load %arg2[%c0, %c0_0] : memref<16x32xf32, #tpu.memory_space<vmem>>, vector<16x32xf32>
    %cst = arith.constant 1.000000e+00 : f32
    %1 = vector.broadcast %cst : f32 to vector<16x32xf32>
    %2 = arith.subf %1, %0 : vector<16x32xf32>
    %cst_1 = arith.constant -1.000000e+05 : f32
    %3 = vector.broadcast %cst_1 : f32 to vector<16x32xf32>
    %4 = arith.mulf %2, %3 : vector<16x32xf32>
    %c0_2 = arith.constant 0 : index
    %c0_3 = arith.constant 0 : index
    %5 = vector.load %arg1[%c0_2, %c0_3] : memref<16x32xf32, #tpu.memory_space<vmem>>, vector<16x32xf32>
    %6 = arith.addf %5, %4 : vector<16x32xf32>
    %cst_4 = arith.constant dense<0xFF800000> : vector<16xf32>
    %7 = vector.multi_reduction <maximumf>, %6, %cst_4 [1] : vector<16x32xf32> to vector<16xf32>
    %8 = vector.shape_cast %7 : vector<16xf32> to vector<16x1xf32>
    %9 = vector.broadcast %8 : vector<16x1xf32> to vector<16x32xf32>
    %10 = arith.subf %6, %9 : vector<16x32xf32>
    %11 = math.exp %10 : vector<16x32xf32>
    %cst_5 = arith.constant dense<0.000000e+00> : vector<16xf32>
    %12 = vector.multi_reduction <add>, %11, %cst_5 [1] : vector<16x32xf32> to vector<16xf32>
    %13 = vector.shape_cast %12 : vector<16xf32> to vector<16x1xf32>
    %14 = tpu.reciprocal %13 {approx = true} : vector<16x1xf32> -> vector<16x1xf32>
    %15 = vector.broadcast %14 : vector<16x1xf32> to vector<16x32xf32>
    %16 = arith.mulf %11, %15 : vector<16x32xf32>
    %c0_6 = arith.constant 0 : index
    %c0_7 = arith.constant 0 : index
    %17 = vector.load %arg3[%c0_6, %c0_7] : memref<16x32xf32, #tpu.memory_space<vmem>>, vector<16x32xf32>
    tpu.vector_store %arg3[%c0_6, %c0_7], %16 {strides = array<i32>} : memref<16x32xf32, #tpu.memory_space<vmem>>, vector<16x32xf32>,
    return
  }
  func.func @transform_0(%arg0: i32) -> (i32, i32) {
    %c0_i32 = arith.constant 0 : i32
    %c0_i32_0 = arith.constant 0 : i32
    return %arg0, %c0_i32 : i32, i32
  }
  func.func @transform_1(%arg0: i32) -> (i32, i32) {
    %c0_i32 = arith.constant 0 : i32
    %c0_i32_0 = arith.constant 0 : i32
    return %arg0, %c0_i32 : i32, i32
  }
  func.func @transform_2(%arg0: i32) -> (i32, i32) {
    %c0_i32 = arith.constant 0 : i32
    %c0_i32_0 = arith.constant 0 : i32
    return %arg0, %c0_i32 : i32, i32
  }
}

</mosaic_0001>

<bundles_post_ra>
// kernel: tpu_custom_call.1
= control target key start
LH: loop header
LB: loop body
LE: loop exit
PB: predicated region body
PF: predicated region fallthrough
CT: control target
= control target key end

     0   :  { %7 = vsyncpa [#allocation3], 0  ;;  %s249_s0 = inlined_call_operand.hbm [shape: f32[16,32], index: 0, kind: input, shape index: {}]   ;;  %s250_s1 = inlined_call_operand.hbm [shape: f32[16,32], index: 1, kind: input, shape index: {}]   ;;  %s251_s2 = inlined_call_operand.hbm [shape: f32[16,32], index: 2, kind: output, shape index: {}]  }
   0x1   :  { %8 = vsyncpa [#allocation6], 0 }
   0x2   :  { %9 = vsyncpa [#allocation4], 0  ;;  %s178_s9 = smov [#allocation2]   ;;  %s106_s13 = scalar_lea.hbm %s249_s0, 256 }
   0x3   :  { %s15_s10 = sshll.u32 %s178_s9, 4  ;;  %p107_p0 = scmp.ne.s32.totalorder %s249_s0, %s106_s13  ;;  %s16_s10 = int_to_ptr.vmem [resolvable:$true] %s15_s10 }
   0x4   :  { %p110_p1 = scmp.lt.u32.totalorder %s106_s13, %s249_s0 }
   0x6   :  { %p112_p2 = pnand %p110_p1, %p107_p0 }
   0x8   :  { %115 = shalt.err (!%p112_p2)
}
   0x9   :  { %s116_s18 = scalar_lea.vmem %s16_s10, 256  ;;  %p121_p4 = scmp.lt.s32.totalorder %s16_s10, %s16_s10 }
   0xa   :  { %p117_p3 = scmp.ne.s32.totalorder %s16_s10, %s116_s18  ;;  %p122_p5 = scmp.lt.s32.totalorder %s116_s18, %s116_s18 }
   0xc   :  { %p123_p6 = por %p122_p5, %p121_p4 }
   0xe   :  { %p124_p7 = pnand %p123_p6, %p117_p3 }
  0x10   :  { %127 = shalt.err (!%p124_p7)
}
  0x11   :  { %s179_s19 = smov 128   ;;  %s180_s20 = smov 8  }
  0x12   :  { %21 = dma.hbm_to_vmem [thread:$0]  %s249_s0, 256, %s16_s10, [#allocation3], %s179_s19, %s179_s19, %s180_s20  }
  0x13   :  { %s181_s23 = smov [#allocation5]   ;;  %s128_s27 = scalar_lea.hbm %s250_s1, 256 }
  0x14   :  { %s27_s24 = sshll.u32 %s181_s23, 4  ;;  %p129_p8 = scmp.ne.s32.totalorder %s250_s1, %s128_s27  ;;  %s28_s24 = int_to_ptr.vmem [resolvable:$true] %s27_s24 }
  0x15   :  { %p132_p9 = scmp.lt.u32.totalorder %s128_s27, %s250_s1 }
  0x17   :  { %p134_p10 = pnand %p132_p9, %p129_p8 }
  0x19   :  { %137 = shalt.err (!%p134_p10)
}
  0x1a   :  { %s138_s4 = scalar_lea.vmem %s28_s24, 256  ;;  %p143_p12 = scmp.lt.s32.totalorder %s28_s24, %s28_s24 }
  0x1b   :  { %p139_p11 = scmp.ne.s32.totalorder %s28_s24, %s138_s4  ;;  %p144_p13 = scmp.lt.s32.totalorder %s138_s4, %s138_s4 }
  0x1d   :  { %p145_p0 = por %p144_p13, %p143_p12 }
  0x1f   :  { %p146_p1 = pnand %p145_p0, %p139_p11 }
  0x21   :  { %149 = shalt.err (!%p146_p1)
}
  0x22   :  { %33 = dma.hbm_to_vmem [thread:$0]  %s250_s1, 256, %s28_s24, [#allocation6], %s179_s19, %s179_s19, %s180_s20  }
  0x23   :  { %172 = dma.done.wait [#allocation3], 256  }
  0x24   :  { %173 = vsyncadd [#allocation3], 4294967040 }
  0x25   :  { %174 = dma.done.wait [#allocation6], 256  }
  0x26   :  { %175 = vsyncadd [#allocation6], 4294967040  ;;  %v40_v0 = vld [vmem:[#allocation5] sm:$0xff]  ;;  %v41_v1 = vld [vmem:[#allocation5 + $0x8] sm:$0xff]  ;;  %vm50_vm0 = vcmask 261120   ;;  %s182_s1 = smov [#allocation7]  }
  0x27   :  { %v42_v2 = vsub.f32 1.0, %v40_v0  ;;  %v43_v3 = vsub.f32 1.0, %v41_v1  ;;  %v46_v4 = vld [vmem:[#allocation2] sm:$0xff]  ;;  %v47_v5 = vld [vmem:[#allocation2 + $0x8] sm:$0xff]  ;;  %s80_s6 = sshll.u32 %s182_s1, 4  ;;  %s81_s6 = int_to_ptr.vmem [resolvable:$true] %s80_s6 }
  0x28   :  { %s150_s7 = scalar_lea.vmem %s81_s6, 256  ;;  %p155_p3 = scmp.lt.s32.totalorder %s81_s6, %s81_s6 }
  0x29   :  { %v44_v6 = vmul.f32 -100000.0, %v42_v2  ;;  %v45_v7 = vmul.f32 -100000.0, %v43_v3  ;;  %p151_p2 = scmp.ne.s32.totalorder %s81_s6, %s150_s7  ;;  %p156_p4 = scmp.lt.s32.totalorder %s150_s7, %s150_s7 }
  0x2b   :  { %v48_v8 = vadd.f32 %v46_v4, %v44_v6  ;;  %v49_v9 = vadd.f32 %v47_v5, %v45_v7  ;;  %p157_p5 = por %p156_p4, %p155_p3 }
  0x2d   :  { %v51_v10 = vsel %vm50_vm0, %v48_v8, -inf  ;;  %v54_v11 = vsel %vm50_vm0, %v49_v9, -inf  ;;  %p158_p6 = pnand %p157_p5, %p151_p2 }
  0x2e   :  { %52 = vmax.xlane.f32.xlu0 %v51_v10 }
  0x32   :  { %55 = vmax.xlane.f32.xlu0 %v54_v11 }
  0xbb   :  { %v53_v12 = vpop.xlane.xlu0 %52 }
  0xbc   :  { %v57_v13 = vsub.f32 %v48_v8, %v53_v12 }
  0xbe   :  { %v59_v14 = vmul.f32 1.442695, %v57_v13 }
  0xbf   :  { %v56_v15 = vpop.xlane.xlu0 %55 }
  0xc0   :  { %98 = vpow2.f32 %v59_v14  ;;  %v58_v16 = vsub.f32 %v49_v9, %v56_v15 }
  0xc2   :  { %v61_v17 = vmul.f32 1.442695, %v58_v16 }
  0xc4   :  { %100 = vpow2.f32 %v61_v17 }
  0xca   :  { %v99_v18 = vpop.eup %98 }
  0xcb   :  { %v63_v19 = vsel %vm50_vm0, %v99_v18, 0.0 }
  0xcc   :  { %64 = vadd.xlane.f32.xlu1 %v63_v19 }
  0xce   :  { %v101_v20 = vpop.eup %100 }
  0xcf   :  { %v66_v21 = vsel %vm50_vm0, %v101_v20, 0.0 }
  0xd0   :  { %67 = vadd.xlane.f32.xlu1 %v66_v21 }
 0x159   :  { %v65_v22 = vpop.xlane.xlu1 %64 }
 0x15a   :  { %102 = vrcp.f32 %v65_v22 }
 0x15d   :  { %v68_v23 = vpop.xlane.xlu1 %67 }
 0x15e   :  { %104 = vrcp.f32 %v68_v23 }
 0x164   :  { %v103_v24 = vpop.eup %102 }
 0x165   :  { %v71_v25 = vmul.f32 %v103_v24, %v99_v18 }
 0x167   :  { %73 = vst.msk [vmem:[#allocation7] sm:$0xff] %vm50_vm0, %v71_v25 }
 0x168   :  { %v105_v26 = vpop.eup %104 }
 0x169   :  { %v72_v27 = vmul.f32 %v105_v26, %v101_v20 }
 0x16b   :  { %74 = vst.msk [vmem:[#allocation7 + $0x8] sm:$0xff] %vm50_vm0, %v72_v27 }
 0x16c   :  { %161 = shalt.err (!%p158_p6)
}
 0x16d   :  { %s162_s10 = scalar_lea.hbm %s251_s2, 256 }
 0x16e   :  { %p163_p7 = scmp.ne.s32.totalorder %s251_s2, %s162_s10  ;;  %p166_p8 = scmp.lt.u32.totalorder %s162_s10, %s251_s2 }
 0x170   :  { %p168_p9 = pnand %p166_p8, %p163_p7 }
 0x172   :  { %171 = shalt.err (!%p168_p9)
}
 0x173   :  { %86 = dma.vmem_to_hbm [thread:$0]  %s81_s6, 256, %s251_s2, [#allocation4], %s179_s19, %s179_s19, %s180_s20  }
 0x174   :  { %176 = dma.done.wait [#allocation4], 256  }
 0x175   :  { %177 = vsyncadd [#allocation4], 4294967040 }
 0x176   :  { %90 = vsyncpa [#allocation3], 1 }
 0x177   :  { %91 = vsyncpa [#allocation6], 1 }
 0x178   :  { %92 = vsyncpa [#allocation4], 1 }

</bundles_post_ra>
